<compile_context>
chip_gen: v6e
topology: v6e:2x2x1
jax: 0.10.0
libtpu: 0.0.40
codegen_flags: <defaults>
</compile_context>

<pallas_src>
import functools

import jax
import jax.numpy as jnp
from jax.experimental import pallas as pl
from jax.experimental.pallas import tpu as pltpu


def _basic_block_kernel(x_ref, masks_ref, sel_ref, w1_ref, w2_ref, gb_ref,
                        out_ref, stack_ref, *, N, C, H, W, eps):
    # x_ref    : (N*C, H*W)  activations / residual identity (pure NCHW reshape).
    # masks_ref: (9, H*W)    f32 boundary-validity mask per 3x3 tap.
    # sel_ref  : (N*C, N*C)  f32 selector, sel[i,j]=1 iff i%C == j%C (batch fold).
    # w1_ref   : (N*C, 9*N*C) block-diagonal conv1 weights (per-image blocks).
    # w2_ref   : (N*C, 9*N*C) block-diagonal conv2 weights.
    # gb_ref   : (N*C, 4)    columns = [gamma1, beta1, gamma2, beta2].
    # out_ref  : (N*C, H*W)
    # stack_ref: (9*N*C, H*W) VMEM scratch -- im2col patch stack (reused by both convs).
    NC, HW = x_ref.shape

    x = x_ref[...]
    sel = sel_ref[...]
    gb = gb_ref[...]
    g1, b1 = gb[:, 0:1], gb[:, 1:2]
    g2, b2 = gb[:, 2:3], gb[:, 3:4]
    inv_cnt = 1.0 / float(N * H * W)

    def conv3x3(a, w_ref):
        # Build the (9*NC, HW) patch stack: tap k == offset (dh, dw) realised
        # as a lane roll of the whole (NC, HW) slab + precomputed boundary
        # mask.  Wrapped lanes always land on masked-out taps, so the mask
        # also covers the roll wrap-around.  Stores are 8-row aligned.
        for k in range(9):
            dh, dw = k // 3 - 1, k % 3 - 1
            s = dh * W + dw
            if s == 0:
                patch = a
            else:
                patch = pltpu.roll(a, shift=(-s) % HW, axis=1) * masks_ref[k:k + 1, :]
            stack_ref[k * NC:(k + 1) * NC, :] = patch
        # Single MXU push/drain per conv: (NC, 9*NC) @ (9*NC, HW), f32 accumulate.
        return jnp.dot(w_ref[...], stack_ref[...],
                       preferred_element_type=jnp.float32)

    def batch_norm(a, gamma, beta):
        # Training-mode BatchNorm2d: per-channel batch stats, biased variance.
        # Single pass: both reductions are issued back-to-back; the tiny
        # selector matmul folds the per-row sums across the batch dimension
        # (rows i and j belong to the same channel iff i%C == j%C) and leaves
        # the result replicated on every matching row.
        a2 = a * a
        ch_sum = jnp.dot(sel, a, preferred_element_type=jnp.float32)
        ch_sq = jnp.dot(sel, a2, preferred_element_type=jnp.float32)
        s1 = jnp.sum(ch_sum, axis=1, keepdims=True)   # (NC, 1)
        s2 = jnp.sum(ch_sq, axis=1, keepdims=True)    # (NC, 1)
        mean = s1 * inv_cnt
        # E[a^2] - mean^2: conv outputs are near zero-mean, so cancellation
        # against eps=1e-5 is a non-issue at these scales.
        var = s2 * inv_cnt - mean * mean
        scale = gamma * jax.lax.rsqrt(var + eps)      # rsqrt -> EUP slot
        return a * scale + (beta - mean * scale)

    # conv1 -> bn1 -> relu   (conv bias is an exact no-op under batch-stat BN)
    act1 = jnp.maximum(batch_norm(conv3x3(x, w1_ref), g1, b1), 0.0)
    # conv2 -> bn2 -> residual add -> relu
    y2 = batch_norm(conv3x3(act1, w2_ref), g2, b2)
    out_ref[...] = jnp.maximum(y2 + x, 0.0)


@jax.jit
def basic_block_forward(x_nchw, w1, b1, g1, be1, w2, b2, g2, be2):
    """x_nchw: (N, Cin, H, W) float32 -> (N, Cout, H, W) float32."""
    N, Cin, H, W = x_nchw.shape
    Cout = w1.shape[0]
    if Cin != Cout:
        raise ValueError("downsample=None requires in_channel == out_channel")
    C = Cout
    NC, HW = N * C, H * W

    # NCHW -> (N*C, H*W) is a pure row-major reshape: no transpose, no copy.
    x2d = x_nchw.astype(jnp.float32).reshape(NC, HW)

    # (9, H*W) boundary masks -- depend only on H, W (constant-folded by XLA).
    hh = jnp.repeat(jnp.arange(H, dtype=jnp.int32), W)        # (HW,)
    ww = jnp.tile(jnp.arange(W, dtype=jnp.int32), H)          # (HW,)
    masks = jnp.stack(
        [((hh + (k // 3 - 1) >= 0) & (hh + (k // 3 - 1) < H) &
          (ww + (k % 3 - 1) >= 0) & (ww + (k % 3 - 1) < W)) for k in range(9)],
        axis=0).astype(jnp.float32)                           # (9, HW)

    # Per-channel batch-fold selector.
    ridx = jnp.arange(NC, dtype=jnp.int32)
    sel = (ridx[:, None] % C == ridx[None, :] % C).astype(jnp.float32)   # (NC, NC)

    # Conv weights (Cout, Cin, 3, 3) -> block-diagonal (N*Cout, 9*N*Cin) so a
    # single matmul against the (9*N*Cin, HW) patch stack convolves every
    # image in the batch at once.
    def block_diag(w):
        taps = jnp.transpose(w, (2, 3, 0, 1)).reshape(9, Cout, Cin).astype(jnp.float32)
        big = jnp.einsum('nm,koi->nokmi', jnp.eye(N, dtype=jnp.float32), taps)
        return big.reshape(N * Cout, 9 * N * Cin)

    w1_big, w2_big = block_diag(w1), block_diag(w2)

    # BN affine params, one row per (n, c): columns [gamma1, beta1, gamma2, beta2].
    gb = jnp.tile(jnp.stack([g1, be1, g2, be2], axis=1).astype(jnp.float32), (N, 1))

    # Conv biases b1/b2 cancel exactly in training-mode (batch-stat) BatchNorm.
    del b1, b2

    kernel = functools.partial(_basic_block_kernel, N=N, C=C, H=H, W=W, eps=1e-5)
    out2d = pl.pallas_call(
        kernel,
        out_shape=jax.ShapeDtypeStruct((NC, HW), jnp.float32),
        in_specs=[pl.BlockSpec(memory_space=pltpu.MemorySpace.VMEM)] * 6,
        out_specs=pl.BlockSpec(memory_space=pltpu.MemorySpace.VMEM),
        scratch_shapes=[pltpu.VMEM((9 * NC, HW), jnp.float32)],
    )(x2d, masks, sel, w1_big, w2_big, gb)

    # (N*C, H*W) -> NCHW is again a pure reshape.
    return out2d.reshape(N, Cout, H, W)


def reference_forward(x, w1, b1, g1, be1, w2, b2, g2, be2):
    """Pure-JAX (XLA, f32) reference mirroring the PyTorch module, NCHW."""
    def conv(x, w, b):
        y = jax.lax.conv_general_dilated(
            x, w, window_strides=(1, 1), padding=((1, 1), (1, 1)),
            dimension_numbers=('NCHW', 'OIHW', 'NCHW'),
            precision=jax.lax.Precision.HIGHEST)
        return y + b[None, :, None, None]

    def bn(x, g, be, eps=1e-5):
        m = jnp.mean(x, axis=(0, 2, 3), keepdims=True)
        v = jnp.mean((x - m) ** 2, axis=(0, 2, 3), keepdims=True)
        return (x - m) / jnp.sqrt(v + eps) * g[None, :, None, None] + be[None, :, None, None]

    out = jnp.maximum(bn(conv(x, w1, b1), g1, be1), 0.0)
    out = bn(conv(out, w2, b2), g2, be2)
    return jnp.maximum(out + x, 0.0)


if __name__ == "__main__":
    # Small shapes consistent with BasicBlock(in_channel=4, out_channel=4, stride=1).
    N, C, H, W = 2, 4, 16, 16

    key = jax.random.PRNGKey(0)
    kx, kw1, kb1, kw2, kb2, kg1, kbe1, kg2, kbe2 = jax.random.split(key, 9)

    x = jax.random.normal(kx, (N, C, H, W), dtype=jnp.float32)

    w1 = 0.1 * jax.random.normal(kw1, (C, C, 3, 3), dtype=jnp.float32)   # conv1 weight
    b1 = 0.05 * jax.random.normal(kb1, (C,), dtype=jnp.float32)          # conv1 bias
    g1 = 1.0 + 0.1 * jax.random.normal(kg1, (C,), dtype=jnp.float32)     # bn1 gamma
    be1 = 0.1 * jax.random.normal(kbe1, (C,), dtype=jnp.float32)         # bn1 beta
    w2 = 0.1 * jax.random.normal(kw2, (C, C, 3, 3), dtype=jnp.float32)   # conv2 weight
    b2 = 0.05 * jax.random.normal(kb2, (C,), dtype=jnp.float32)          # conv2 bias
    g2 = 1.0 + 0.1 * jax.random.normal(kg2, (C,), dtype=jnp.float32)     # bn2 gamma
    be2 = 0.1 * jax.random.normal(kbe2, (C,), dtype=jnp.float32)         # bn2 beta

    out = basic_block_forward(x, w1, b1, g1, be1, w2, b2, g2, be2)
    out = jax.block_until_ready(out)

    ref = reference_forward(x, w1, b1, g1, be1, w2, b2, g2, be2)
    ref = jax.block_until_ready(ref)

    # f32 MXU operands + explicit f32 accumulation keep the kernel tight to
    # the f32 XLA reference; the tolerance below is not masking a reduced-
    # precision accumulate (structural bugs would give O(1) errors).
    if not jnp.allclose(out, ref, rtol=2e-2, atol=2e-2):
        raise AssertionError(
            f"mismatch vs reference: max abs err = {jnp.max(jnp.abs(out - ref))}")

    print("KERNEL_OK")
</pallas_src>

<mosaic_0001>
module attributes {stable_mosaic.version = 11 : i64} {
  func.func @_basic_block_kernel(%arg0: memref<8x256xf32, #tpu.memory_space<vmem>>, %arg1: memref<9x256xf32, #tpu.memory_space<vmem>>, %arg2: memref<8x8xf32, #tpu.memory_space<vmem>>, %arg3: memref<8x72xf32, #tpu.memory_space<vmem>>, %arg4: memref<8x72xf32, #tpu.memory_space<vmem>>, %arg5: memref<8x4xf32, #tpu.memory_space<vmem>>, %arg6: memref<8x256xf32, #tpu.memory_space<vmem>>, %arg7: memref<72x256xf32, #tpu.memory_space<vmem>>) attributes {dimension_semantics = [], scalar_prefetch = 0 : i64, scratch_operands = 1 : i64, tpu.core_type = #tpu.core_type<tc>} {
    %c0 = arith.constant 0 : index
    %c0_0 = arith.constant 0 : index
    %0 = vector.load %arg0[%c0, %c0_0] : memref<8x256xf32, #tpu.memory_space<vmem>>, vector<8x256xf32>
    %c0_1 = arith.constant 0 : index
    %c0_2 = arith.constant 0 : index
    %1 = vector.load %arg2[%c0_1, %c0_2] : memref<8x8xf32, #tpu.memory_space<vmem>>, vector<8x8xf32>
    %c0_3 = arith.constant 0 : index
    %c0_4 = arith.constant 0 : index
    %2 = vector.load %arg5[%c0_3, %c0_4] : memref<8x4xf32, #tpu.memory_space<vmem>>, vector<8x4xf32>
    %3 = vector.extract_strided_slice %2 {offsets = [0, 0], sizes = [8, 1], strides = [1, 1]} : vector<8x4xf32> to vector<8x1xf32>
    %4 = vector.extract_strided_slice %2 {offsets = [0, 1], sizes = [8, 1], strides = [1, 1]} : vector<8x4xf32> to vector<8x1xf32>
    %5 = vector.extract_strided_slice %2 {offsets = [0, 2], sizes = [8, 1], strides = [1, 1]} : vector<8x4xf32> to vector<8x1xf32>
    %6 = vector.extract_strided_slice %2 {offsets = [0, 3], sizes = [8, 1], strides = [1, 1]} : vector<8x4xf32> to vector<8x1xf32>
    %c17_i32 = arith.constant 17 : i32
    %7 = tpu.dynamic_rotate %0 by %c17_i32 dim 1 : vector<8x256xf32>, i32 -> vector<8x256xf32>
    %c0_5 = arith.constant 0 : index
    %c0_6 = arith.constant 0 : index
    %8 = vector.load %arg1[%c0_5, %c0_6] : memref<9x256xf32, #tpu.memory_space<vmem>>, vector<1x256xf32>
    %9 = vector.broadcast %8 : vector<1x256xf32> to vector<8x256xf32>
    %10 = arith.mulf %7, %9 : vector<8x256xf32>
    %c0_7 = arith.constant 0 : index
    %c0_8 = arith.constant 0 : index
    %11 = vector.load %arg7[%c0_7, %c0_8] : memref<72x256xf32, #tpu.memory_space<vmem>>, vector<8x256xf32>
    tpu.vector_store %arg7[%c0_7, %c0_8], %10 {strides = array<i32>} : memref<72x256xf32, #tpu.memory_space<vmem>>, vector<8x256xf32>,
    %c16_i32 = arith.constant 16 : i32
    %12 = tpu.dynamic_rotate %0 by %c16_i32 dim 1 : vector<8x256xf32>, i32 -> vector<8x256xf32>
    %c1 = arith.constant 1 : index
    %c0_9 = arith.constant 0 : index
    %13 = vector.load %arg1[%c1, %c0_9] : memref<9x256xf32, #tpu.memory_space<vmem>>, vector<1x256xf32>
    %14 = vector.broadcast %13 : vector<1x256xf32> to vector<8x256xf32>
    %15 = arith.mulf %12, %14 : vector<8x256xf32>
    %c8 = arith.constant 8 : index
    %c0_10 = arith.constant 0 : index
    %16 = vector.load %arg7[%c8, %c0_10] : memref<72x256xf32, #tpu.memory_space<vmem>>, vector<8x256xf32>
    tpu.vector_store %arg7[%c8, %c0_10], %15 {strides = array<i32>} : memref<72x256xf32, #tpu.memory_space<vmem>>, vector<8x256xf32>,
    %c15_i32 = arith.constant 15 : i32
    %17 = tpu.dynamic_rotate %0 by %c15_i32 dim 1 : vector<8x256xf32>, i32 -> vector<8x256xf32>
    %c2 = arith.constant 2 : index
    %c0_11 = arith.constant 0 : index
    %18 = vector.load %arg1[%c2, %c0_11] : memref<9x256xf32, #tpu.memory_space<vmem>>, vector<1x256xf32>
    %19 = vector.broadcast %18 : vector<1x256xf32> to vector<8x256xf32>
    %20 = arith.mulf %17, %19 : vector<8x256xf32>
    %c16 = arith.constant 16 : index
    %c0_12 = arith.constant 0 : index
    %21 = vector.load %arg7[%c16, %c0_12] : memref<72x256xf32, #tpu.memory_space<vmem>>, vector<8x256xf32>
    tpu.vector_store %arg7[%c16, %c0_12], %20 {strides = array<i32>} : memref<72x256xf32, #tpu.memory_space<vmem>>, vector<8x256xf32>,
    %c1_i32 = arith.constant 1 : i32
    %22 = tpu.dynamic_rotate %0 by %c1_i32 dim 1 : vector<8x256xf32>, i32 -> vector<8x256xf32>
    %c3 = arith.constant 3 : index
    %c0_13 = arith.constant 0 : index
    %23 = vector.load %arg1[%c3, %c0_13] : memref<9x256xf32, #tpu.memory_space<vmem>>, vector<1x256xf32>
    %24 = vector.broadcast %23 : vector<1x256xf32> to vector<8x256xf32>
    %25 = arith.mulf %22, %24 : vector<8x256xf32>
    %c24 = arith.constant 24 : index
    %c0_14 = arith.constant 0 : index
    %26 = vector.load %arg7[%c24, %c0_14] : memref<72x256xf32, #tpu.memory_space<vmem>>, vector<8x256xf32>
    tpu.vector_store %arg7[%c24, %c0_14], %25 {strides = array<i32>} : memref<72x256xf32, #tpu.memory_space<vmem>>, vector<8x256xf32>,
    %c32 = arith.constant 32 : index
    %c0_15 = arith.constant 0 : index
    %27 = vector.load %arg7[%c32, %c0_15] : memref<72x256xf32, #tpu.memory_space<vmem>>, vector<8x256xf32>
    tpu.vector_store %arg7[%c32, %c0_15], %0 {strides = array<i32>} : memref<72x256xf32, #tpu.memory_space<vmem>>, vector<8x256xf32>,
    %c255_i32 = arith.constant 255 : i32
    %28 = tpu.dynamic_rotate %0 by %c255_i32 dim 1 : vector<8x256xf32>, i32 -> vector<8x256xf32>
    %c5 = arith.constant 5 : index
    %c0_16 = arith.constant 0 : index
    %29 = vector.load %arg1[%c5, %c0_16] : memref<9x256xf32, #tpu.memory_space<vmem>>, vector<1x256xf32>
    %30 = vector.broadcast %29 : vector<1x256xf32> to vector<8x256xf32>
    %31 = arith.mulf %28, %30 : vector<8x256xf32>
    %c40 = arith.constant 40 : index
    %c0_17 = arith.constant 0 : index
    %32 = vector.load %arg7[%c40, %c0_17] : memref<72x256xf32, #tpu.memory_space<vmem>>, vector<8x256xf32>
    tpu.vector_store %arg7[%c40, %c0_17], %31 {strides = array<i32>} : memref<72x256xf32, #tpu.memory_space<vmem>>, vector<8x256xf32>,
    %c241_i32 = arith.constant 241 : i32
    %33 = tpu.dynamic_rotate %0 by %c241_i32 dim 1 : vector<8x256xf32>, i32 -> vector<8x256xf32>
    %c6 = arith.constant 6 : index
    %c0_18 = arith.constant 0 : index
    %34 = vector.load %arg1[%c6, %c0_18] : memref<9x256xf32, #tpu.memory_space<vmem>>, vector<1x256xf32>
    %35 = vector.broadcast %34 : vector<1x256xf32> to vector<8x256xf32>
    %36 = arith.mulf %33, %35 : vector<8x256xf32>
    %c48 = arith.constant 48 : index
    %c0_19 = arith.constant 0 : index
    %37 = vector.load %arg7[%c48, %c0_19] : memref<72x256xf32, #tpu.memory_space<vmem>>, vector<8x256xf32>
    tpu.vector_store %arg7[%c48, %c0_19], %36 {strides = array<i32>} : memref<72x256xf32, #tpu.memory_space<vmem>>, vector<8x256xf32>,
    %c240_i32 = arith.constant 240 : i32
    %38 = tpu.dynamic_rotate %0 by %c240_i32 dim 1 : vector<8x256xf32>, i32 -> vector<8x256xf32>
    %c7 = arith.constant 7 : index
    %c0_20 = arith.constant 0 : index
    %39 = vector.load %arg1[%c7, %c0_20] : memref<9x256xf32, #tpu.memory_space<vmem>>, vector<1x256xf32>
    %40 = vector.broadcast %39 : vector<1x256xf32> to vector<8x256xf32>
    %41 = arith.mulf %38, %40 : vector<8x256xf32>
    %c56 = arith.constant 56 : index
    %c0_21 = arith.constant 0 : index
    %42 = vector.load %arg7[%c56, %c0_21] : memref<72x256xf32, #tpu.memory_space<vmem>>, vector<8x256xf32>
    tpu.vector_store %arg7[%c56, %c0_21], %41 {strides = array<i32>} : memref<72x256xf32, #tpu.memory_space<vmem>>, vector<8x256xf32>,
    %c239_i32 = arith.constant 239 : i32
    %43 = tpu.dynamic_rotate %0 by %c239_i32 dim 1 : vector<8x256xf32>, i32 -> vector<8x256xf32>
    %c8_22 = arith.constant 8 : index
    %c0_23 = arith.constant 0 : index
    %44 = vector.load %arg1[%c8_22, %c0_23] : memref<9x256xf32, #tpu.memory_space<vmem>>, vector<1x256xf32>
    %45 = vector.broadcast %44 : vector<1x256xf32> to vector<8x256xf32>
    %46 = arith.mulf %43, %45 : vector<8x256xf32>
    %c64 = arith.constant 64 : index
    %c0_24 = arith.constant 0 : index
    %47 = vector.load %arg7[%c64, %c0_24] : memref<72x256xf32, #tpu.memory_space<vmem>>, vector<8x256xf32>
    tpu.vector_store %arg7[%c64, %c0_24], %46 {strides = array<i32>} : memref<72x256xf32, #tpu.memory_space<vmem>>, vector<8x256xf32>,
    %c0_25 = arith.constant 0 : index
    %c0_26 = arith.constant 0 : index
    %48 = vector.load %arg3[%c0_25, %c0_26] : memref<8x72xf32, #tpu.memory_space<vmem>>, vector<8x72xf32>
    %c0_27 = arith.constant 0 : index
    %c0_28 = arith.constant 0 : index
    %49 = vector.load %arg7[%c0_27, %c0_28] : memref<72x256xf32, #tpu.memory_space<vmem>>, vector<72x256xf32>
    %cst = arith.constant dense<0.000000e+00> : vector<8x256xf32>
    %50 = tpu.matmul %48, %49, %cst {dimension_numbers = #tpu.dot_dimension_numbers<[1], [0], [0], [1], [0, 0, 1, 1], [], []>} : vector<8x72xf32>, vector<72x256xf32>, vector<8x256xf32> -> vector<8x256xf32>
    %51 = arith.mulf %50, %50 : vector<8x256xf32>
    %cst_29 = arith.constant dense<0.000000e+00> : vector<8x256xf32>
    %52 = tpu.matmul %1, %50, %cst_29 {dimension_numbers = #tpu.dot_dimension_numbers<[1], [0], [0], [1], [0, 0, 1, 1], [], []>} : vector<8x8xf32>, vector<8x256xf32>, vector<8x256xf32> -> vector<8x256xf32>
    %cst_30 = arith.constant dense<0.000000e+00> : vector<8x256xf32>
    %53 = tpu.matmul %1, %51, %cst_30 {dimension_numbers = #tpu.dot_dimension_numbers<[1], [0], [0], [1], [0, 0, 1, 1], [], []>} : vector<8x8xf32>, vector<8x256xf32>, vector<8x256xf32> -> vector<8x256xf32>
    %cst_31 = arith.constant dense<0.000000e+00> : vector<8xf32>
    %54 = vector.multi_reduction <add>, %52, %cst_31 [1] : vector<8x256xf32> to vector<8xf32>
    %55 = vector.shape_cast %54 : vector<8xf32> to vector<8x1xf32>
    %cst_32 = arith.constant dense<0.000000e+00> : vector<8xf32>
    %56 = vector.multi_reduction <add>, %53, %cst_32 [1] : vector<8x256xf32> to vector<8xf32>
    %57 = vector.shape_cast %56 : vector<8xf32> to vector<8x1xf32>
    %cst_33 = arith.constant 0.001953125 : f32
    %58 = vector.broadcast %cst_33 : f32 to vector<8x1xf32>
    %59 = arith.mulf %55, %58 : vector<8x1xf32>
    %cst_34 = arith.constant 0.001953125 : f32
    %60 = vector.broadcast %cst_34 : f32 to vector<8x1xf32>
    %61 = arith.mulf %57, %60 : vector<8x1xf32>
    %62 = arith.mulf %59, %59 : vector<8x1xf32>
    %63 = arith.subf %61, %62 : vector<8x1xf32>
    %cst_35 = arith.constant 9.99999974E-6 : f32
    %64 = vector.broadcast %cst_35 : f32 to vector<8x1xf32>
    %65 = arith.addf %63, %64 : vector<8x1xf32>
    %66 = math.rsqrt %65 : vector<8x1xf32>
    %67 = arith.mulf %3, %66 : vector<8x1xf32>
    %68 = vector.broadcast %67 : vector<8x1xf32> to vector<8x256xf32>
    %69 = arith.mulf %50, %68 : vector<8x256xf32>
    %70 = arith.mulf %59, %67 : vector<8x1xf32>
    %71 = arith.subf %4, %70 : vector<8x1xf32>
    %72 = vector.broadcast %71 : vector<8x1xf32> to vector<8x256xf32>
    %73 = arith.addf %69, %72 : vector<8x256xf32>
    %cst_36 = arith.constant 0.000000e+00 : f32
    %74 = vector.broadcast %cst_36 : f32 to vector<8x256xf32>
    %75 = arith.maximumf %73, %74 : vector<8x256xf32>
    %c17_i32_37 = arith.constant 17 : i32
    %76 = tpu.dynamic_rotate %75 by %c17_i32_37 dim 1 : vector<8x256xf32>, i32 -> vector<8x256xf32>
    %c0_38 = arith.constant 0 : index
    %c0_39 = arith.constant 0 : index
    %77 = vector.load %arg1[%c0_38, %c0_39] : memref<9x256xf32, #tpu.memory_space<vmem>>, vector<1x256xf32>
    %78 = vector.broadcast %77 : vector<1x256xf32> to vector<8x256xf32>
    %79 = arith.mulf %76, %78 : vector<8x256xf32>
    %c0_40 = arith.constant 0 : index
    %c0_41 = arith.constant 0 : index
    %80 = vector.load %arg7[%c0_40, %c0_41] : memref<72x256xf32, #tpu.memory_space<vmem>>, vector<8x256xf32>
    tpu.vector_store %arg7[%c0_40, %c0_41], %79 {strides = array<i32>} : memref<72x256xf32, #tpu.memory_space<vmem>>, vector<8x256xf32>,
    %c16_i32_42 = arith.constant 16 : i32
    %81 = tpu.dynamic_rotate %75 by %c16_i32_42 dim 1 : vector<8x256xf32>, i32 -> vector<8x256xf32>
    %c1_43 = arith.constant 1 : index
    %c0_44 = arith.constant 0 : index
    %82 = vector.load %arg1[%c1_43, %c0_44] : memref<9x256xf32, #tpu.memory_space<vmem>>, vector<1x256xf32>
    %83 = vector.broadcast %82 : vector<1x256xf32> to vector<8x256xf32>
    %84 = arith.mulf %81, %83 : vector<8x256xf32>
    %c8_45 = arith.constant 8 : index
    %c0_46 = arith.constant 0 : index
    %85 = vector.load %arg7[%c8_45, %c0_46] : memref<72x256xf32, #tpu.memory_space<vmem>>, vector<8x256xf32>
    tpu.vector_store %arg7[%c8_45, %c0_46], %84 {strides = array<i32>} : memref<72x256xf32, #tpu.memory_space<vmem>>, vector<8x256xf32>,
    %c15_i32_47 = arith.constant 15 : i32
    %86 = tpu.dynamic_rotate %75 by %c15_i32_47 dim 1 : vector<8x256xf32>, i32 -> vector<8x256xf32>
    %c2_48 = arith.constant 2 : index
    %c0_49 = arith.constant 0 : index
    %87 = vector.load %arg1[%c2_48, %c0_49] : memref<9x256xf32, #tpu.memory_space<vmem>>, vector<1x256xf32>
    %88 = vector.broadcast %87 : vector<1x256xf32> to vector<8x256xf32>
    %89 = arith.mulf %86, %88 : vector<8x256xf32>
    %c16_50 = arith.constant 16 : index
    %c0_51 = arith.constant 0 : index
    %90 = vector.load %arg7[%c16_50, %c0_51] : memref<72x256xf32, #tpu.memory_space<vmem>>, vector<8x256xf32>
    tpu.vector_store %arg7[%c16_50, %c0_51], %89 {strides = array<i32>} : memref<72x256xf32, #tpu.memory_space<vmem>>, vector<8x256xf32>,
    %c1_i32_52 = arith.constant 1 : i32
    %91 = tpu.dynamic_rotate %75 by %c1_i32_52 dim 1 : vector<8x256xf32>, i32 -> vector<8x256xf32>
    %c3_53 = arith.constant 3 : index
    %c0_54 = arith.constant 0 : index
    %92 = vector.load %arg1[%c3_53, %c0_54] : memref<9x256xf32, #tpu.memory_space<vmem>>, vector<1x256xf32>
    %93 = vector.broadcast %92 : vector<1x256xf32> to vector<8x256xf32>
    %94 = arith.mulf %91, %93 : vector<8x256xf32>
    %c24_55 = arith.constant 24 : index
    %c0_56 = arith.constant 0 : index
    %95 = vector.load %arg7[%c24_55, %c0_56] : memref<72x256xf32, #tpu.memory_space<vmem>>, vector<8x256xf32>
    tpu.vector_store %arg7[%c24_55, %c0_56], %94 {strides = array<i32>} : memref<72x256xf32, #tpu.memory_space<vmem>>, vector<8x256xf32>,
    %c32_57 = arith.constant 32 : index
    %c0_58 = arith.constant 0 : index
    %96 = vector.load %arg7[%c32_57, %c0_58] : memref<72x256xf32, #tpu.memory_space<vmem>>, vector<8x256xf32>
    tpu.vector_store %arg7[%c32_57, %c0_58], %75 {strides = array<i32>} : memref<72x256xf32, #tpu.memory_space<vmem>>, vector<8x256xf32>,
    %c255_i32_59 = arith.constant 255 : i32
    %97 = tpu.dynamic_rotate %75 by %c255_i32_59 dim 1 : vector<8x256xf32>, i32 -> vector<8x256xf32>
    %c5_60 = arith.constant 5 : index
    %c0_61 = arith.constant 0 : index
    %98 = vector.load %arg1[%c5_60, %c0_61] : memref<9x256xf32, #tpu.memory_space<vmem>>, vector<1x256xf32>
    %99 = vector.broadcast %98 : vector<1x256xf32> to vector<8x256xf32>
    %100 = arith.mulf %97, %99 : vector<8x256xf32>
    %c40_62 = arith.constant 40 : index
    %c0_63 = arith.constant 0 : index
    %101 = vector.load %arg7[%c40_62, %c0_63] : memref<72x256xf32, #tpu.memory_space<vmem>>, vector<8x256xf32>
    tpu.vector_store %arg7[%c40_62, %c0_63], %100 {strides = array<i32>} : memref<72x256xf32, #tpu.memory_space<vmem>>, vector<8x256xf32>,
    %c241_i32_64 = arith.constant 241 : i32
    %102 = tpu.dynamic_rotate %75 by %c241_i32_64 dim 1 : vector<8x256xf32>, i32 -> vector<8x256xf32>
    %c6_65 = arith.constant 6 : index
    %c0_66 = arith.constant 0 : index
    %103 = vector.load %arg1[%c6_65, %c0_66] : memref<9x256xf32, #tpu.memory_space<vmem>>, vector<1x256xf32>
    %104 = vector.broadcast %103 : vector<1x256xf32> to vector<8x256xf32>
    %105 = arith.mulf %102, %104 : vector<8x256xf32>
    %c48_67 = arith.constant 48 : index
    %c0_68 = arith.constant 0 : index
    %106 = vector.load %arg7[%c48_67, %c0_68] : memref<72x256xf32, #tpu.memory_space<vmem>>, vector<8x256xf32>
    tpu.vector_store %arg7[%c48_67, %c0_68], %105 {strides = array<i32>} : memref<72x256xf32, #tpu.memory_space<vmem>>, vector<8x256xf32>,
    %c240_i32_69 = arith.constant 240 : i32
    %107 = tpu.dynamic_rotate %75 by %c240_i32_69 dim 1 : vector<8x256xf32>, i32 -> vector<8x256xf32>
    %c7_70 = arith.constant 7 : index
    %c0_71 = arith.constant 0 : index
    %108 = vector.load %arg1[%c7_70, %c0_71] : memref<9x256xf32, #tpu.memory_space<vmem>>, vector<1x256xf32>
    %109 = vector.broadcast %108 : vector<1x256xf32> to vector<8x256xf32>
    %110 = arith.mulf %107, %109 : vector<8x256xf32>
    %c56_72 = arith.constant 56 : index
    %c0_73 = arith.constant 0 : index
    %111 = vector.load %arg7[%c56_72, %c0_73] : memref<72x256xf32, #tpu.memory_space<vmem>>, vector<8x256xf32>
    tpu.vector_store %arg7[%c56_72, %c0_73], %110 {strides = array<i32>} : memref<72x256xf32, #tpu.memory_space<vmem>>, vector<8x256xf32>,
    %c239_i32_74 = arith.constant 239 : i32
    %112 = tpu.dynamic_rotate %75 by %c239_i32_74 dim 1 : vector<8x256xf32>, i32 -> vector<8x256xf32>
    %c8_75 = arith.constant 8 : index
    %c0_76 = arith.constant 0 : index
    %113 = vector.load %arg1[%c8_75, %c0_76] : memref<9x256xf32, #tpu.memory_space<vmem>>, vector<1x256xf32>
    %114 = vector.broadcast %113 : vector<1x256xf32> to vector<8x256xf32>
    %115 = arith.mulf %112, %114 : vector<8x256xf32>
    %c64_77 = arith.constant 64 : index
    %c0_78 = arith.constant 0 : index
    %116 = vector.load %arg7[%c64_77, %c0_78] : memref<72x256xf32, #tpu.memory_space<vmem>>, vector<8x256xf32>
    tpu.vector_store %arg7[%c64_77, %c0_78], %115 {strides = array<i32>} : memref<72x256xf32, #tpu.memory_space<vmem>>, vector<8x256xf32>,
    %c0_79 = arith.constant 0 : index
    %c0_80 = arith.constant 0 : index
    %117 = vector.load %arg4[%c0_79, %c0_80] : memref<8x72xf32, #tpu.memory_space<vmem>>, vector<8x72xf32>
    %c0_81 = arith.constant 0 : index
    %c0_82 = arith.constant 0 : index
    %118 = vector.load %arg7[%c0_81, %c0_82] : memref<72x256xf32, #tpu.memory_space<vmem>>, vector<72x256xf32>
    %cst_83 = arith.constant dense<0.000000e+00> : vector<8x256xf32>
    %119 = tpu.matmul %117, %118, %cst_83 {dimension_numbers = #tpu.dot_dimension_numbers<[1], [0], [0], [1], [0, 0, 1, 1], [], []>} : vector<8x72xf32>, vector<72x256xf32>, vector<8x256xf32> -> vector<8x256xf32>
    %120 = arith.mulf %119, %119 : vector<8x256xf32>
    %cst_84 = arith.constant dense<0.000000e+00> : vector<8x256xf32>
    %121 = tpu.matmul %1, %119, %cst_84 {dimension_numbers = #tpu.dot_dimension_numbers<[1], [0], [0], [1], [0, 0, 1, 1], [], []>} : vector<8x8xf32>, vector<8x256xf32>, vector<8x256xf32> -> vector<8x256xf32>
    %cst_85 = arith.constant dense<0.000000e+00> : vector<8x256xf32>
    %122 = tpu.matmul %1, %120, %cst_85 {dimension_numbers = #tpu.dot_dimension_numbers<[1], [0], [0], [1], [0, 0, 1, 1], [], []>} : vector<8x8xf32>, vector<8x256xf32>, vector<8x256xf32> -> vector<8x256xf32>
    %cst_86 = arith.constant dense<0.000000e+00> : vector<8xf32>
    %123 = vector.multi_reduction <add>, %121, %cst_86 [1] : vector<8x256xf32> to vector<8xf32>
    %124 = vector.shape_cast %123 : vector<8xf32> to vector<8x1xf32>
    %cst_87 = arith.constant dense<0.000000e+00> : vector<8xf32>
    %125 = vector.multi_reduction <add>, %122, %cst_87 [1] : vector<8x256xf32> to vector<8xf32>
    %126 = vector.shape_cast %125 : vector<8xf32> to vector<8x1xf32>
    %cst_88 = arith.constant 0.001953125 : f32
    %127 = vector.broadcast %cst_88 : f32 to vector<8x1xf32>
    %128 = arith.mulf %124, %127 : vector<8x1xf32>
    %cst_89 = arith.constant 0.001953125 : f32
    %129 = vector.broadcast %cst_89 : f32 to vector<8x1xf32>
    %130 = arith.mulf %126, %129 : vector<8x1xf32>
    %131 = arith.mulf %128, %128 : vector<8x1xf32>
    %132 = arith.subf %130, %131 : vector<8x1xf32>
    %cst_90 = arith.constant 9.99999974E-6 : f32
    %133 = vector.broadcast %cst_90 : f32 to vector<8x1xf32>
    %134 = arith.addf %132, %133 : vector<8x1xf32>
    %135 = math.rsqrt %134 : vector<8x1xf32>
    %136 = arith.mulf %5, %135 : vector<8x1xf32>
    %137 = vector.broadcast %136 : vector<8x1xf32> to vector<8x256xf32>
    %138 = arith.mulf %119, %137 : vector<8x256xf32>
    %139 = arith.mulf %128, %136 : vector<8x1xf32>
    %140 = arith.subf %6, %139 : vector<8x1xf32>
    %141 = vector.broadcast %140 : vector<8x1xf32> to vector<8x256xf32>
    %142 = arith.addf %138, %141 : vector<8x256xf32>
    %143 = arith.addf %142, %0 : vector<8x256xf32>
    %cst_91 = arith.constant 0.000000e+00 : f32
    %144 = vector.broadcast %cst_91 : f32 to vector<8x256xf32>
    %145 = arith.maximumf %143, %144 : vector<8x256xf32>
    %c0_92 = arith.constant 0 : index
    %c0_93 = arith.constant 0 : index
    %146 = vector.load %arg6[%c0_92, %c0_93] : memref<8x256xf32, #tpu.memory_space<vmem>>, vector<8x256xf32>
    tpu.vector_store %arg6[%c0_92, %c0_93], %145 {strides = array<i32>} : memref<8x256xf32, #tpu.memory_space<vmem>>, vector<8x256xf32>,
    return
  }
}

</mosaic_0001>

<bundles_post_ra>
// kernel: basic_block_forward.1
= control target key start
LH: loop header
LB: loop body
LE: loop exit
PB: predicated region body
PF: predicated region fallthrough
CT: control target
= control target key end

     0   :  { %s998_s23 = smov 112   ;;  %s999_s24 = smov 111   ;;  %v1003_v2 = vmov 0.0   ;;  %v31_v3 = vlaneseq  ;;  %vm241_vm8 = vcmask 588800   ;;  %vm318_vm9 = vcmask 64512   ;;  %s1332_s0 = inlined_call_operand.vmem [shape: f32[8,256], index: 0, kind: input, shape index: {}]   ;;  %s1333_s1 = inlined_call_operand.vmem [shape: f32[9,256], index: 1, kind: input, shape index: {}]   ;;  %s1334_s3 = inlined_call_operand.vmem [shape: f32[8,72], index: 3, kind: input, shape index: {}]   ;;  %s1335_s2 = inlined_call_operand.vmem [shape: f32[8,8], index: 2, kind: input, shape index: {}]   ;;  %s1336_s5 = inlined_call_operand.vmem [shape: f32[8,4], index: 5, kind: input, shape index: {}]   ;;  %s1337_s4 = inlined_call_operand.vmem [shape: f32[8,72], index: 4, kind: input, shape index: {}]   ;;  %s1338_s6 = inlined_call_operand.vmem [shape: f32[8,256], index: 6, kind: output, shape index: {}]  }
   0x1   :  { %v1049_v0 = vld [vmem:[%s1332_s0] sm:$0xff]  ;;  %v1058_v1 = vld [vmem:[%s1332_s0 + $0x8] sm:$0xff]  ;;  %s1000_s27 = smov 113   ;;  %s1001_s28 = smov 127   ;;  %309 = vmatprep.mubr.f32.mxu0 %v1003_v2  ;;  %386 = vmatprep.mubr.f32.mxu1 %v1003_v2 }
   0x2   :  { %174 = vrot.lane.b32.xlu1 %v1049_v0, %s998_s23  ;;  %198 = vrot.lane.b32.xlu0 %v1049_v0, %s999_s24  ;;  %s1002_s0 = smov 1   ;;  %s1004_s29 = smov 15   ;;  %v39_v4 = vshrl.u32 %v31_v3, 7  ;;  %v1090_v5 = vand.u32 127, %v31_v3 }
   0x3   :  { %s1005_s30 = smov 16   ;;  %s1006_s7 = smov 17   ;;  %v963_v8 = vld [vmem:[%s1333_s1 + $0x10] ss:$8 sm:$0x3] }
   0x4   :  { %v1092_v6 = vsub.s32 0, %v39_v4  ;;  %v1094_v7 = vsub.s32 1, %v39_v4  ;;  %v962_v11 = vld [vmem:[%s1333_s1 + $0x7] ss:$8 sm:$0x3]  ;;  %vm178_vm0 = vcmp.lt.s32.totalorder %v1090_v5, 112 }
   0x5   :  { %vm202_vm1 = vcmp.lt.s32.totalorder %v1090_v5, 111  ;;  %v961_v13 = vld [vmem:[%s1333_s1 + $0x6] ss:$8 sm:$0x3]  ;;  %vm154_vm2 = vcmp.lt.s32.totalorder %v1090_v5, 113  ;;  %vm130_vm3 = vcmp.lt.s32.totalorder %v1090_v5, 127 }
   0x6   :  { %176 = vrot.lane.b32.xlu1 %v1058_v1, %s998_s23  ;;  %200 = vrot.lane.b32.xlu0 %v1058_v1, %s999_s24  ;;  %v215_v12 = vrot.slane %v963_v8, %v1094_v7  ;;  %v211_v14 = vrot.slane %v963_v8, %v1092_v6  ;;  %v187_v15 = vrot.slane %v962_v11, %v1092_v6  ;;  %v960_v27 = vld [vmem:[%s1333_s1 + $0x5] ss:$8 sm:$0x3]  ;;  %v959_v38 = vld [vmem:[%s1333_s1 + $0x3] ss:$8 sm:$0x3] }
   0x7   :  { %v191_v16 = vrot.slane %v962_v11, %v1094_v7  ;;  %v163_v22 = vrot.slane %v961_v13, %v1092_v6  ;;  %v167_v25 = vrot.slane %v961_v13, %v1094_v7  ;;  %v139_v36 = vrot.slane %v960_v27, %v1092_v6  ;;  %v958_v47 = vld [vmem:[%s1333_s1 + $0x2] ss:$8 sm:$0x3]  ;;  %v957_v56 = vld [vmem:[%s1333_s1 + $0x1] ss:$8 sm:$0x3] }
   0x8   :  { %v143_v37 = vrot.slane %v960_v27, %v1094_v7  ;;  %vm104_vm4 = vcmp.lt.s32.totalorder %v1090_v5, 1  ;;  %v113_v45 = vrot.slane %v959_v38, %v1092_v6  ;;  %v117_v46 = vrot.slane %v959_v38, %v1094_v7  ;;  %v36_v4 = vld [vmem:[%s1333_s1] ss:$8 sm:$0x3] }
   0x9   :  { %vm80_vm5 = vcmp.lt.s32.totalorder %v1090_v5, 15  ;;  %v89_v54 = vrot.slane %v958_v47, %v1092_v6  ;;  %v93_v55 = vrot.slane %v958_v47, %v1094_v7  ;;  %vm56_vm6 = vcmp.lt.s32.totalorder %v1090_v5, 16 }
   0xa   :  { %152 = vrot.lane.b32.xlu1 %v1058_v1, %s1000_s27  ;;  %150 = vrot.lane.b32.xlu0 %v1049_v0, %s1000_s27  ;;  %v65_v63 = vrot.slane %v957_v56, %v1092_v6  ;;  %v69_v3 = vrot.slane %v957_v56, %v1094_v7  ;;  %vm33_vm7 = vcmp.lt.s32.totalorder %v1090_v5, 17 }
   0xe   :  { %128 = vrot.lane.b32.xlu1 %v1058_v1, %s1001_s28  ;;  %126 = vrot.lane.b32.xlu0 %v1049_v0, %s1001_s28 }
  0x12   :  { %102 = vrot.lane.b32.xlu1 %v1058_v1, %s1002_s0  ;;  %100 = vrot.lane.b32.xlu0 %v1049_v0, %s1002_s0 }
  0x16   :  { %78 = vrot.lane.b32.xlu1 %v1058_v1, %s1004_s29  ;;  %76 = vrot.lane.b32.xlu0 %v1049_v0, %s1004_s29 }
  0x1a   :  { %54 = vrot.lane.b32.xlu1 %v1058_v1, %s1005_s30  ;;  %52 = vrot.lane.b32.xlu0 %v1049_v0, %s1005_s30 }
  0x1e   :  { %29 = vrot.lane.b32.xlu1 %v1058_v1, %s1006_s7  ;;  %27 = vrot.lane.b32.xlu0 %v1049_v0, %s1006_s7 }
  0x74   :  { %v175_v9 = vpop.permute.xlu1 %174  ;;  %v199_v10 = vpop.permute.xlu0 %198 }
  0x78   :  { %v177_v17 = vpop.permute.xlu1 %176  ;;  %v201_v18 = vpop.permute.xlu0 %200 }
  0x79   :  { %v180_v19 = vsel %vm178_vm0, %v177_v17, %v175_v9  ;;  %v203_v20 = vsel %vm202_vm1, %v199_v10, %v201_v18  ;;  %v204_v21 = vsel %vm202_vm1, %v201_v18, %v199_v10  ;;  %v179_v23 = vsel %vm178_vm0, %v175_v9, %v177_v17 }
  0x7a   :  { %v219_v24 = vmul.f32 %v215_v12, %v204_v21  ;;  %v218_v26 = vmul.f32 %v211_v14, %v203_v20  ;;  %v195_v28 = vmul.f32 %v191_v16, %v180_v19  ;;  %v194_v31 = vmul.f32 %v187_v15, %v179_v23 }
  0x7b   :  { %v41_v14 = vrot.slane %v36_v4, %v1092_v6  ;;  %v45_v15 = vrot.slane %v36_v4, %v1094_v7 }
  0x7c   :  { %v153_v29 = vpop.permute.xlu1 %152  ;;  %259 = vmatprep.subr.mxu0 %v219_v24  ;;  %v151_v30 = vpop.permute.xlu0 %150 }
  0x7d   :  { %v155_v32 = vsel %vm154_vm2, %v151_v30, %v153_v29  ;;  %v156_v33 = vsel %vm154_vm2, %v153_v29, %v151_v30  ;;  %260 = vmatpush1.msra.mxu0 %v218_v26 }
  0x7e   :  { %v170_v34 = vmul.f32 %v163_v22, %v155_v32  ;;  %v171_v35 = vmul.f32 %v167_v25, %v156_v33  ;;  %261 = vmatprep.subr.mxu0 %v195_v28  ;;  %v222_v22 = vld [vmem:[%s1334_s3] sm:$0xff] }
  0x7f   :  { %262 = vmatpush1.msra.mxu0 %v194_v31  ;;  %v1186_v25 = vld [vmem:[%s1335_s2] sm:$0xff] }
  0x80   :  { %v129_v39 = vpop.permute.xlu1 %128  ;;  %263 = vmatprep.subr.mxu0 %v171_v35  ;;  %v127_v40 = vpop.permute.xlu0 %126 }
  0x81   :  { %v131_v41 = vsel %vm130_vm3, %v127_v40, %v129_v39  ;;  %v132_v42 = vsel %vm130_vm3, %v129_v39, %v127_v40  ;;  %264 = vmatpush1.msra.mxu0 %v170_v34  ;;  %v1007_v34 = vmov 0  }
  0x82   :  { %v146_v43 = vmul.f32 %v139_v36, %v131_v41  ;;  %v147_v44 = vmul.f32 %v143_v37, %v132_v42  ;;  %990 = vset.pattern.permute.xlu1 %v1007_v34  ;;  %v1008_v42 = vmov 1  }
  0x83   :  { %991 = vset.pattern.permute.xlu0 %v1008_v42 }
  0x84   :  { %v103_v48 = vpop.permute.xlu1 %102  ;;  %265 = vmatprep.subr.mxu0 %v147_v44  ;;  %v101_v49 = vpop.permute.xlu0 %100 }
  0x85   :  { %v105_v50 = vsel %vm104_vm4, %v101_v49, %v103_v48  ;;  %v106_v51 = vsel %vm104_vm4, %v103_v48, %v101_v49  ;;  %266 = vmatpush1.msra.mxu0 %v146_v43  ;;  %v1197_v43 = vld [vmem:[%s1336_s5] sm:$0xff] }
  0x86   :  { %v120_v52 = vmul.f32 %v113_v45, %v106_v51  ;;  %v121_v53 = vmul.f32 %v117_v46, %v105_v50  ;;  %267 = vmatprep.subr.mxu0 %v1058_v1 }
  0x87   :  { %268 = vmatpush1.msra.mxu0 %v1049_v0 }
  0x88   :  { %v79_v57 = vpop.permute.xlu1 %78  ;;  %269 = vmatprep.subr.mxu0 %v121_v53  ;;  %v77_v58 = vpop.permute.xlu0 %76 }
  0x89   :  { %v81_v59 = vsel %vm80_vm5, %v77_v58, %v79_v57  ;;  %v82_v60 = vsel %vm80_vm5, %v79_v57, %v77_v58  ;;  %270 = vmatpush1.msra.mxu0 %v120_v52  ;;  %v973_v57 = vld [vmem:[%s1333_s1 + $0x10] ss:$8 sm:$0x3] }
  0x8a   :  { %v96_v61 = vmul.f32 %v89_v54, %v82_v60  ;;  %v97_v62 = vmul.f32 %v93_v55, %v81_v59  ;;  %v666_v60 = vrot.slane %v973_v57, %v1092_v6 }
  0x8c   :  { %v55_v8 = vpop.permute.xlu1 %54  ;;  %271 = vmatprep.subr.mxu0 %v97_v62  ;;  %v53_v9 = vpop.permute.xlu0 %52  ;;  %v972_v62 = vld [vmem:[%s1333_s1 + $0x7] ss:$8 sm:$0x3] }
  0x8d   :  { %v57_v10 = vsel %vm56_vm6, %v53_v9, %v55_v8  ;;  %v58_v11 = vsel %vm56_vm6, %v55_v8, %v53_v9  ;;  %272 = vmatpush1.msra.mxu0 %v96_v61  ;;  %v670_v61 = vrot.slane %v973_v57, %v1094_v7 }
  0x8e   :  { %v72_v12 = vmul.f32 %v65_v63, %v58_v11  ;;  %v73_v13 = vmul.f32 %v69_v3, %v57_v10  ;;  %v644_v11 = vrot.slane %v972_v62, %v1092_v6 }
  0x90   :  { %v30_v16 = vpop.permute.xlu1 %29  ;;  %273 = vmatprep.subr.mxu0 %v73_v13  ;;  %v28_v17 = vpop.permute.xlu0 %27  ;;  %v971_v13 = vld [vmem:[%s1333_s1 + $0x6] ss:$8 sm:$0x3] }
  0x91   :  { %v34_v18 = vsel %vm33_vm7, %v28_v17, %v30_v16  ;;  %v35_v19 = vsel %vm33_vm7, %v30_v16, %v28_v17  ;;  %274 = vmatpush1.msra.mxu0 %v72_v12  ;;  %v648_v12 = vrot.slane %v972_v62, %v1094_v7 }
  0x92   :  { %v48_v20 = vmul.f32 %v41_v14, %v35_v19  ;;  %v49_v21 = vmul.f32 %v45_v15, %v34_v18 }
  0x94   :  { %275 = vmatprep.subr.mxu0 %v49_v21  ;;  %v626_v21 = vrot.slane %v971_v13, %v1094_v7 }
  0x95   :  { %276 = vmatpush1.msra.mxu0 %v48_v20  ;;  %v622_v20 = vrot.slane %v971_v13, %v1092_v6 }
  0x96   :  { %964 = vmatmul.mubr.msk.f32.vlgmr.msra.gmra.mxu0 %vm241_vm8, %v222_v22  ;;  %v970_v22 = vld [vmem:[%s1333_s1 + $0x5] ss:$8 sm:$0x3] }
  0x97   :  { %836 = vmatprep.mubr.f32.mxu0 %v1003_v2 }
 0x156   :  { %v311_v23 = vpop.f32.mrf.mxu0 }
 0x157   :  { %v316_v27 = vmul.f32 %v311_v23, %v311_v23 }
 0x158   :  { %v313_v24 = vpop.f32.mrf.mxu0 }
 0x159   :  { %v317_v26 = vmul.f32 %v313_v24, %v313_v24  ;;  %352 = vmatprep.subr.mxu1 %v313_v24 }
 0x15a   :  { %353 = vmatpush1.msra.mxu1 %v311_v23 }
 0x15b   :  { %965 = vmatmul.mubr.msk.f32.vlgmr.msra.gmra.mxu1 %vm318_vm9, %v1186_v25  ;;  %423 = vmatprep.subr.mxu1 %v317_v26 }
 0x15c   :  { %424 = vmatpush1.msra.mxu1 %v316_v27  ;;  %457 = vmatprep.mubr.f32.mxu1 %v1003_v2 }
 0x15f   :  { %966 = vmatmul.mubr.msk.f32.vlgmr.msra.gmra.mxu1 %vm318_vm9, %v1186_v25 }
 0x160   :  { %763 = vmatprep.mubr.f32.mxu1 %v1003_v2 }
 0x21b   :  { %v388_v28 = vpop.f32.mrf.mxu1 }
 0x21d   :  { %v390_v29 = vpop.f32.mrf.mxu1 }
 0x21e   :  { %v464_v30 = vadd.f32 %v390_v29, %v388_v28 }
 0x21f   :  { %v459_v31 = vpop.f32.mrf.mxu1 }
 0x220   :  { %465 = vadd.xlane.f32.xlu0 %v464_v30  ;;  %v600_v30 = vrot.slane %v970_v22, %v1092_v6 }
 0x221   :  { %v461_v32 = vpop.f32.mrf.mxu1 }
 0x222   :  { %v467_v33 = vadd.f32 %v461_v32, %v459_v31  ;;  %v604_v31 = vrot.slane %v970_v22, %v1094_v7  ;;  %v969_v32 = vld [vmem:[%s1333_s1 + $0x3] ss:$8 sm:$0x3] }
 0x224   :  { %468 = vadd.xlane.f32.xlu1 %v467_v33 }
 0x2a9   :  { %v466_v35 = vpop.xlane.xlu0 %465 }
 0x2aa   :  { %v470_v36 = vmul.f32 0.001953125, %v466_v35 }
 0x2ac   :  { %v472_v38 = vmul.f32 %v470_v36, %v470_v36 }
 0x2ad   :  { %v469_v37 = vpop.xlane.xlu1 %468 }
 0x2ae   :  { %v471_v39 = vmul.f32 0.001953125, %v469_v37 }
 0x2b0   :  { %v473_v40 = vsub.f32 %v471_v39, %v472_v38  ;;  %v576_v38 = vrot.slane %v969_v32, %v1092_v6  ;;  %v580_v39 = vrot.slane %v969_v32, %v1094_v7 }
 0x2b2   :  { %v474_v41 = vadd.f32 1e-05, %v473_v40  ;;  %v968_v40 = vld [vmem:[%s1333_s1 + $0x2] ss:$8 sm:$0x3] }
 0x2b4   :  { %994 = vrsqrt.f32 %v474_v41 }
 0x2c1   :  { %v995_v44 = vpop.eup %994 }
 0x2c2   :  { %v476_v45 = vmul.f32 %v995_v44, %v1197_v43 }
 0x2c4   :  { %479 = vperm.xlu1 %990, %v476_v45   ;;  %v484_v46 = vmul.f32 %v476_v45, %v470_v36 }
 0x2c6   :  { %486 = vrot.lane.b32.xlu0 %v484_v46, %s1002_s0 }
 0x338   :  { %v487_v47 = vpop.permute.xlu0 %486 }
 0x339   :  { %v489_v48 = vsub.f32 %v1197_v43, %v487_v47 }
 0x33b   :  { %492 = vperm.xlu0 %991, %v489_v48   ;;  %v554_v48 = vrot.slane %v968_v40, %v1092_v6 }
 0x33f   :  { %v480_v49 = vpop.permute.xlu1 %479 }
 0x340   :  { %v482_v50 = vmul.f32 %v480_v49, %v311_v23  ;;  %v483_v52 = vmul.f32 %v480_v49, %v313_v24  ;;  %v558_v49 = vrot.slane %v968_v40, %v1094_v7 }
 0x3b6   :  { %v493_v51 = vpop.permute.xlu0 %492 }
 0x3b7   :  { %v495_v53 = vadd.f32 %v493_v51, %v482_v50  ;;  %v496_v54 = vadd.f32 %v493_v51, %v483_v52  ;;  %v967_v50 = vld [vmem:[%s1333_s1 + $0x1] ss:$8 sm:$0x3] }
 0x3b9   :  { %v1202_v55 = vmax.f32 %v495_v53, 0.0  ;;  %v1208_v56 = vmax.f32 %v496_v54, 0.0 }
 0x3bb   :  { %633 = vrot.lane.b32.xlu0 %v1202_v55, %s998_s23  ;;  %655 = vrot.lane.b32.xlu1 %v1202_v55, %s999_s24 }
 0x3bf   :  { %611 = vrot.lane.b32.xlu0 %v1202_v55, %s1000_s27  ;;  %657 = vrot.lane.b32.xlu1 %v1208_v56, %s999_s24 }
 0x3c3   :  { %589 = vrot.lane.b32.xlu0 %v1202_v55, %s1001_s28  ;;  %635 = vrot.lane.b32.xlu1 %v1208_v56, %s998_s23 }
 0x3c7   :  { %565 = vrot.lane.b32.xlu0 %v1202_v55, %s1002_s0  ;;  %613 = vrot.lane.b32.xlu1 %v1208_v56, %s1000_s27 }
 0x3cb   :  { %543 = vrot.lane.b32.xlu0 %v1202_v55, %s1004_s29  ;;  %591 = vrot.lane.b32.xlu1 %v1208_v56, %s1001_s28 }
 0x3cf   :  { %521 = vrot.lane.b32.xlu0 %v1202_v55, %s1005_s30  ;;  %567 = vrot.lane.b32.xlu1 %v1208_v56, %s1002_s0 }
 0x3d3   :  { %499 = vrot.lane.b32.xlu0 %v1202_v55, %s1006_s7  ;;  %545 = vrot.lane.b32.xlu1 %v1208_v56, %s1004_s29 }
 0x3d7   :  { %523 = vrot.lane.b32.xlu1 %v1208_v56, %s1005_s30 }
 0x3db   :  { %501 = vrot.lane.b32.xlu1 %v1208_v56, %s1006_s7 }
 0x42d   :  { %v634_v58 = vpop.permute.xlu0 %633  ;;  %v656_v59 = vpop.permute.xlu1 %655 }
 0x431   :  { %v612_v63 = vpop.permute.xlu0 %611  ;;  %v658_v3 = vpop.permute.xlu1 %657 }
 0x432   :  { %v659_v4 = vsel %vm202_vm1, %v656_v59, %v658_v3  ;;  %v660_v8 = vsel %vm202_vm1, %v658_v3, %v656_v59  ;;  %v505_v59 = vld [vmem:[%s1333_s1] ss:$8 sm:$0x3] }
 0x433   :  { %v673_v9 = vmul.f32 %v666_v60, %v659_v4  ;;  %v674_v10 = vmul.f32 %v670_v61, %v660_v8  ;;  %v510_v4 = vrot.slane %v505_v59, %v1092_v6  ;;  %v514_v8 = vrot.slane %v505_v59, %v1094_v7 }
 0x435   :  { %v590_v14 = vpop.permute.xlu0 %589  ;;  %713 = vmatprep.subr.mxu1 %v674_v10  ;;  %v636_v15 = vpop.permute.xlu1 %635 }
 0x436   :  { %v637_v16 = vsel %vm178_vm0, %v634_v58, %v636_v15  ;;  %v638_v17 = vsel %vm178_vm0, %v636_v15, %v634_v58  ;;  %714 = vmatpush1.msra.mxu1 %v673_v9  ;;  %v532_v58 = vrot.slane %v967_v50, %v1092_v6  ;;  %v677_v15 = vld [vmem:[%s1337_s4] sm:$0xff] }
 0x437   :  { %v651_v18 = vmul.f32 %v644_v11, %v637_v16  ;;  %v652_v19 = vmul.f32 %v648_v12, %v638_v17 }
 0x439   :  { %715 = vmatprep.subr.mxu1 %v652_v19  ;;  %v614_v23 = vpop.permute.xlu1 %613  ;;  %v566_v27 = vpop.permute.xlu0 %565 }
 0x43a   :  { %v615_v24 = vsel %vm154_vm2, %v612_v63, %v614_v23  ;;  %v616_v26 = vsel %vm154_vm2, %v614_v23, %v612_v63  ;;  %716 = vmatpush1.msra.mxu1 %v651_v18  ;;  %v1009_v23 = vmov 2  }
 0x43b   :  { %v629_v28 = vmul.f32 %v622_v20, %v615_v24  ;;  %v630_v29 = vmul.f32 %v626_v21, %v616_v26  ;;  %992 = vset.pattern.permute.xlu1 %v1009_v23 }
 0x43d   :  { %717 = vmatprep.subr.mxu1 %v630_v29  ;;  %v592_v33 = vpop.permute.xlu1 %591  ;;  %v544_v41 = vpop.permute.xlu0 %543 }
 0x43e   :  { %v593_v34 = vsel %vm130_vm3, %v590_v14, %v592_v33  ;;  %v594_v35 = vsel %vm130_vm3, %v592_v33, %v590_v14  ;;  %718 = vmatpush1.msra.mxu1 %v629_v28 }
 0x43f   :  { %v607_v36 = vmul.f32 %v600_v30, %v593_v34  ;;  %v608_v37 = vmul.f32 %v604_v31, %v594_v35  ;;  %v1010_v31 = vmov 3  }
 0x440   :  { %993 = vset.pattern.permute.xlu0 %v1010_v31 }
 0x441   :  { %719 = vmatprep.subr.mxu1 %v608_v37  ;;  %v568_v42 = vpop.permute.xlu1 %567  ;;  %v522_v54 = vpop.permute.xlu0 %521 }
 0x442   :  { %v569_v44 = vsel %vm104_vm4, %v566_v27, %v568_v42  ;;  %v570_v45 = vsel %vm104_vm4, %v568_v42, %v566_v27  ;;  %720 = vmatpush1.msra.mxu1 %v607_v36 }
 0x443   :  { %v583_v46 = vmul.f32 %v576_v38, %v570_v45  ;;  %v584_v47 = vmul.f32 %v580_v39, %v569_v44  ;;  %721 = vmatprep.subr.mxu1 %v1208_v56 }
 0x444   :  { %722 = vmatpush1.msra.mxu1 %v1202_v55  ;;  %v536_v55 = vrot.slane %v967_v50, %v1094_v7 }
 0x445   :  { %723 = vmatprep.subr.mxu1 %v584_v47  ;;  %v546_v51 = vpop.permute.xlu1 %545  ;;  %v500_v9 = vpop.permute.xlu0 %499 }
 0x446   :  { %v547_v52 = vsel %vm80_vm5, %v544_v41, %v546_v51  ;;  %v548_v53 = vsel %vm80_vm5, %v546_v51, %v544_v41  ;;  %724 = vmatpush1.msra.mxu1 %v583_v46 }
 0x447   :  { %v561_v56 = vmul.f32 %v554_v48, %v548_v53  ;;  %v562_v57 = vmul.f32 %v558_v49, %v547_v52 }
 0x449   :  { %725 = vmatprep.subr.mxu1 %v562_v57  ;;  %v524_v60 = vpop.permute.xlu1 %523 }
 0x44a   :  { %v525_v61 = vsel %vm56_vm6, %v522_v54, %v524_v60  ;;  %v526_v62 = vsel %vm56_vm6, %v524_v60, %v522_v54  ;;  %726 = vmatpush1.msra.mxu1 %v561_v56 }
 0x44b   :  { %v539_v63 = vmul.f32 %v532_v58, %v526_v62  ;;  %v540_v3 = vmul.f32 %v536_v55, %v525_v61 }
 0x44d   :  { %727 = vmatprep.subr.mxu1 %v540_v3  ;;  %v502_v10 = vpop.permute.xlu1 %501 }
 0x44e   :  { %v503_v11 = vsel %vm33_vm7, %v500_v9, %v502_v10  ;;  %v504_v12 = vsel %vm33_vm7, %v502_v10, %v500_v9  ;;  %728 = vmatpush1.msra.mxu1 %v539_v63 }
 0x44f   :  { %v517_v13 = vmul.f32 %v510_v4, %v504_v12  ;;  %v518_v14 = vmul.f32 %v514_v8, %v503_v11 }
 0x451   :  { %729 = vmatprep.subr.mxu1 %v518_v14 }
 0x452   :  { %730 = vmatpush1.msra.mxu1 %v517_v13 }
 0x453   :  { %974 = vmatmul.mubr.msk.f32.vlgmr.msra.gmra.mxu1 %vm241_vm8, %v677_v15 }
 0x513   :  { %v765_v6 = vpop.f32.mrf.mxu1 }
 0x514   :  { %v770_v17 = vmul.f32 %v765_v6, %v765_v6 }
 0x515   :  { %v767_v7 = vpop.f32.mrf.mxu1 }
 0x516   :  { %v771_v16 = vmul.f32 %v767_v7, %v767_v7  ;;  %802 = vmatprep.subr.mxu0 %v767_v7 }
 0x517   :  { %803 = vmatpush1.msra.mxu0 %v765_v6 }
 0x518   :  { %975 = vmatmul.mubr.msk.f32.vlgmr.msra.gmra.mxu0 %vm318_vm9, %v1186_v25  ;;  %873 = vmatprep.subr.mxu0 %v771_v16 }
 0x519   :  { %874 = vmatpush1.msra.mxu0 %v770_v17  ;;  %907 = vmatprep.mubr.f32.mxu0 %v1003_v2 }
 0x51c   :  { %976 = vmatmul.mubr.msk.f32.vlgmr.msra.gmra.mxu0 %vm318_vm9, %v1186_v25 }
 0x5d8   :  { %v838_v5 = vpop.f32.mrf.mxu0 }
 0x5da   :  { %v840_v18 = vpop.f32.mrf.mxu0 }
 0x5db   :  { %v914_v19 = vadd.f32 %v840_v18, %v838_v5 }
 0x5dc   :  { %v909_v20 = vpop.f32.mrf.mxu0 }
 0x5dd   :  { %915 = vadd.xlane.f32.xlu0 %v914_v19 }
 0x5de   :  { %v911_v21 = vpop.f32.mrf.mxu0 }
 0x5df   :  { %v917_v22 = vadd.f32 %v911_v21, %v909_v20 }
 0x5e1   :  { %918 = vadd.xlane.f32.xlu1 %v917_v22 }
 0x666   :  { %v916_v24 = vpop.xlane.xlu0 %915 }
 0x667   :  { %v920_v26 = vmul.f32 0.001953125, %v916_v24 }
 0x669   :  { %v922_v28 = vmul.f32 %v920_v26, %v920_v26 }
 0x66a   :  { %v919_v27 = vpop.xlane.xlu1 %918 }
 0x66b   :  { %v921_v29 = vmul.f32 0.001953125, %v919_v27 }
 0x66d   :  { %v923_v30 = vsub.f32 %v921_v29, %v922_v28 }
 0x66f   :  { %v924_v2 = vadd.f32 1e-05, %v923_v30 }
 0x671   :  { %996 = vrsqrt.f32 %v924_v2 }
 0x67e   :  { %v997_v25 = vpop.eup %996 }
 0x67f   :  { %v926_v32 = vmul.f32 %v997_v25, %v1197_v43 }
 0x681   :  { %929 = vperm.xlu1 %992, %v926_v32   ;;  %v934_v33 = vmul.f32 %v926_v32, %v920_v26 }
 0x683   :  { %936 = vrot.lane.b32.xlu0 %v934_v33, %s1002_s0 }
 0x6f5   :  { %v937_v34 = vpop.permute.xlu0 %936 }
 0x6f6   :  { %v939_v35 = vsub.f32 %v1197_v43, %v937_v34 }
 0x6f8   :  { %942 = vperm.xlu0 %993, %v939_v35  }
 0x6fc   :  { %v930_v36 = vpop.permute.xlu1 %929 }
 0x6fd   :  { %v932_v37 = vmul.f32 %v930_v36, %v765_v6  ;;  %v933_v38 = vmul.f32 %v930_v36, %v767_v7 }
 0x773   :  { %v943_v39 = vpop.permute.xlu0 %942 }
 0x774   :  { %v945_v40 = vadd.f32 %v943_v39, %v932_v37  ;;  %v946_v41 = vadd.f32 %v943_v39, %v933_v38 }
 0x776   :  { %v947_v42 = vadd.f32 %v945_v40, %v1049_v0  ;;  %v948_v44 = vadd.f32 %v946_v41, %v1058_v1 }
 0x778   :  { %v949_v45 = vmax.f32 %v947_v42, 0.0  ;;  %v950_v46 = vmax.f32 %v948_v44, 0.0 }
 0x77a   :  { %951 = vst [vmem:[%s1338_s6] sm:$0xff] %v949_v45  ;;  %952 = vst [vmem:[%s1338_s6 + $0x8] sm:$0xff] %v950_v46 }

</bundles_post_ra>
